<compile_context>
chip_gen: v5e
topology: v5e:2x2
jax: 0.10.0
libtpu: 0.0.40
codegen_flags: <defaults>
</compile_context>

<pallas_src>
import math

import jax
import jax.numpy as jnp
from jax.experimental import pallas as pl
from jax.experimental.pallas import tpu as pltpu

_LANE = 128            # minor block dims must be a multiple of 128 or the full dim
_MIB = 1 << 20


def _default_vmem_budget():
    """Total double-buffered (in + out) VMEM working-set budget in bytes.

    ~24 MiB is enough to sit at the HBM roofline on v5e/v6e/v7x (>=2 MiB
    blocks already reach ~85% of roofline); it is capped against physical
    VMEM so v7x (64 MiB physical) keeps generous headroom.  An explicit
    vmem_limit_bytes is always passed, so v5e's 16 MiB *default* scoped
    limit is irrelevant.
    """
    try:
        cap = int(pltpu.get_tpu_info().vmem_capacity_bytes)
    except Exception:
        cap = 64 * _MIB            # be conservative: v7x has the smallest VMEM
    return min(24 * _MIB, cap // 3)


def _divisors(n):
    out = []
    d = 1
    while d * d <= n:
        if n % d == 0:
            out.append(d)
            out.append(n // d)
        d += 1
    return out


def _largest_divisor_leq(n, cap):
    best = 1
    for d in _divisors(n):
        if best < d <= cap:
            best = d
    return best


def _dma_eff(run_bytes):
    """Crude DMA efficiency: long contiguous runs amortize per-row descriptor
    overhead (modeled as ~512 B equivalent)."""
    return run_bytes / (run_bytes + 512.0)


def _tail_copy_kernel(x_ref, o_ref):
    """o = trailing o_ref.shape[-1] lanes of the fetched window (static offset).

    On the exact-fetch path the BlockSpec already fetched only the tail, so
    `tail == 0` and this lowers to a pure vld/vst copy (lane-dense stores);
    on the trailing-window path `tail` is a small static in-VMEM slice.
    """
    tail = x_ref.shape[-1] - o_ref.shape[-1]
    o_ref[...] = x_ref[..., tail:]


def last_pooler(x, num_prompt_tokens, vmem_budget_bytes=None):
    """Pallas implementation of LastPooler.forward: x[..., -P:] on the last axis."""
    P = int(num_prompt_tokens)
    S = int(x.shape[-1])
    assert 0 < P <= S, "num_prompt_tokens must be in (0, seq_len]"

    lead = tuple(int(d) for d in x.shape[:-1])
    N = 1
    for d in lead:
        N *= d
    x2 = x.reshape(N, S)                       # free for a contiguous array

    itemsize = jnp.dtype(x.dtype).itemsize
    sub = max(8, 32 // itemsize)               # sublane multiple: 8/16/32 (f32/bf16/i8)
    budget = int(vmem_budget_bytes or _default_vmem_budget())
    start = S - P                              # first kept lane

    # --- Path A: exact tail fetch with Blocked lane tiles (zero over-read).
    #     Needs the tail start and width on 128-lane boundaries; with blocked
    #     indexing the lane tile must divide gcd(P, start).
    tp_a = None
    if P % _LANE == 0 and start % _LANE == 0:
        g = math.gcd(P, start) if start else P
        lanes_cap = max(_LANE, (budget // (4 * sub * itemsize)) // _LANE * _LANE)
        tp_a = _LANE * _largest_divisor_leq(
            g // _LANE, max(1, min(P, lanes_cap) // _LANE))

    # --- Path B: smallest 128-aligned *trailing* window W (W | S, W >= P),
    #     last P lanes sliced in-kernel.  Over-read = W - P lanes per row
    #     (0 when W == P, usually < P/8; full row only if S is not 128-aligned).
    w_b = S
    if S % _LANE == 0:
        for d in _divisors(S // _LANE):
            wd = d * _LANE
            if P <= wd < w_b:
                w_b = wd

    # Pick the cheaper path under a crude bytes / DMA-efficiency model.
    cost_b = (w_b * itemsize) / _dma_eff(w_b * itemsize) \
             + (P * itemsize) / _dma_eff(P * itemsize)
    use_a = False
    if tp_a is not None:
        cost_a = 2.0 * (P * itemsize) / _dma_eff(tp_a * itemsize)
        use_a = cost_a <= cost_b
    # TODO(synk): an element-offset fetch (pl.Element on the lane dim, or a
    # manual pltpu.make_async_copy from x_hbm.at[:, pl.ds(S - P + k*TP, TP)])
    # would give exact, gcd-free tail fetches for every shape; kept on the
    # well-trodden Blocked path here for portability.

    if use_a:
        tp_in = tp_out = tp_a
        lane_steps = P // tp_a
    else:
        tp_in, tp_out = w_b, P
        lane_steps = 1

    # --- Row tile: dtype-aware sublane multiple sized to the VMEM budget,
    #     capped so the grid keeps >= 2 row tiles / >= 4 total steps when the
    #     shape allows (software pipelining + v7x megacore sharding).
    row_bytes = 2 * (tp_in + tp_out) * itemsize          # double-buffered in+out
    budget_rows = max(1, budget // row_bytes)
    want_tiles = max(2, -(-4 // lane_steps))
    if N <= sub:
        tr = N                                           # full dim is always legal
    else:
        per_tile = -(-N // want_tiles)                   # ceil(N / want_tiles)
        per_tile = -(-per_tile // sub) * sub             # round up to sublane mult
        tr = min(budget_rows, per_tile)
        tr = max(sub, (tr // sub) * sub)                 # round down, keep >= sub
        tr = min(tr, (N // sub) * sub)
    grid_rows = pl.cdiv(N, tr)                           # partial last block is fine

    if use_a:
        k0 = start // tp_in                              # first tail block (static)
        grid = (grid_rows, lane_steps)
        in_specs = [pl.BlockSpec((tr, tp_in), lambda r, k: (r, k0 + k))]
        out_specs = pl.BlockSpec((tr, tp_out), lambda r, k: (r, k))
    else:
        jw = S // tp_in - 1                              # trailing window block index
        grid = (grid_rows,)
        in_specs = [pl.BlockSpec((tr, tp_in), lambda r: (r, jw))]
        out_specs = pl.BlockSpec((tr, tp_out), lambda r: (r, 0))

    # Explicit scoped-VMEM limit: covers the double-buffered working set with
    # headroom, independent of each generation's default (v5e: 16 MiB), while
    # staying well under v7x's 64 MiB physical VMEM.
    ws = 2 * tr * (tp_in + tp_out) * itemsize
    vmem_limit = int(min(48 * _MIB, max(ws + 4 * _MIB, 16 * _MIB)))

    out2 = pl.pallas_call(
        _tail_copy_kernel,
        out_shape=jax.ShapeDtypeStruct((N, P), x.dtype),
        grid=grid,
        in_specs=in_specs,
        out_specs=out_specs,
        compiler_params=pltpu.CompilerParams(
            dimension_semantics=("parallel",) * len(grid),
            vmem_limit_bytes=vmem_limit),
    )(x2)
    return out2.reshape(lead + (P,))


if __name__ == "__main__":
    key = jax.random.PRNGKey(0)
    cases = [
        # (B, H, S, P)
        (2, 4, 16, 8),      # small & unaligned: trailing-window path, W == S
        (2, 8, 384, 128),   # 128-aligned tail: exact blocked fetch, zero over-read
        (1, 16, 512, 96),   # unaligned P, aligned S: 128-lane trailing window +
                            # static in-kernel slice (bounded over-read)
    ]
    for idx, (B, H, S, P) in enumerate(cases):
        k = jax.random.fold_in(key, idx)
        x = jax.random.normal(k, (B, H, S), dtype=jnp.float32)
        out = jax.block_until_ready(last_pooler(x, P))
        ref = x[:, :, -P:]
        assert out.shape == (B, H, P)
        assert jnp.array_equal(out, ref), f"mismatch for case {(B, H, S, P)}"
    print("KERNEL_OK")
</pallas_src>

<mosaic_0001>
module attributes {stable_mosaic.version = 11 : i64} {
  func.func @_tail_copy_kernel(%arg0: i32, %arg1: memref<8x16xf32, #tpu.memory_space<vmem>>, %arg2: memref<8x8xf32, #tpu.memory_space<vmem>>) attributes {dimension_semantics = [#tpu.dimension_semantics<parallel>], iteration_bounds = array<i64: 1>, scalar_prefetch = 0 : i64, scratch_operands = 0 : i64, tpu.core_type = #tpu.core_type<tc>, window_params = [{transform_indices = @transform_0, window_bounds = array<i64: 8, 16>}, {transform_indices = @transform_1, window_bounds = array<i64: 8, 8>}]} {
    %c0 = arith.constant 0 : index
    %c8 = arith.constant 8 : index
    %0 = vector.load %arg1[%c0, %c8] : memref<8x16xf32, #tpu.memory_space<vmem>>, vector<8x8xf32>
    %c0_0 = arith.constant 0 : index
    %c0_1 = arith.constant 0 : index
    %1 = vector.load %arg2[%c0_0, %c0_1] : memref<8x8xf32, #tpu.memory_space<vmem>>, vector<8x8xf32>
    tpu.vector_store %arg2[%c0_0, %c0_1], %0 {strides = array<i32>} : memref<8x8xf32, #tpu.memory_space<vmem>>, vector<8x8xf32>,
    return
  }
  func.func @transform_0(%arg0: i32) -> (i32, i32) {
    %c0_i32 = arith.constant 0 : i32
    %c0_i32_0 = arith.constant 0 : i32
    return %arg0, %c0_i32 : i32, i32
  }
  func.func @transform_1(%arg0: i32) -> (i32, i32) {
    %c0_i32 = arith.constant 0 : i32
    %c0_i32_0 = arith.constant 0 : i32
    return %arg0, %c0_i32 : i32, i32
  }
}

</mosaic_0001>

<bundles_post_ra>
// kernel: tpu_custom_call.1
= control target key start
LH: loop header
LB: loop body
LE: loop exit
PB: predicated region body
PF: predicated region fallthrough
CT: control target
= control target key end

     0   :  { %6 = vsyncpa [#allocation3], 0  ;;  %s121_s0 = inlined_call_operand.hbm [shape: f32[8,16], index: 0, kind: input, shape index: {}]   ;;  %s122_s1 = inlined_call_operand.hbm [shape: f32[8,8], index: 1, kind: output, shape index: {}]  }
   0x1   :  { %7 = vsyncpa [#allocation4], 0  ;;  %s13_s8 = sshll.u32 %s121_s0, 4  ;;  %s102_s9 = smov [#allocation2]   ;;  %s14_s8 = int_to_ptr.hbm [resolvable:$true] %s13_s8 }
   0x2   :  { %s15_s10 = sshll.u32 %s102_s9, 4  ;;  %s16_s10 = int_to_ptr.vmem [resolvable:$true] %s15_s10 }
   0x3   :  { %18 = dma.hbm_to_vmem [thread:$0]  %s14_s8, 128, %s16_s10, [#allocation3]  }
   0x4   :  { %98 = dma.done.wait [#allocation3], 128  }
   0x5   :  { %99 = vsyncadd [#allocation3], 4294967168  ;;  %v23_v0 = vld [vmem:[#allocation2] sm:$0xff]  ;;  %s103_s11 = smov 120   ;;  %s104_s12 = smov [#allocation5]   ;;  %vm28_vm0 = vcmask 64512  }
   0x6   :  { %25 = vrot.lane.b32.xlu0 %v23_v0, %s103_s11  ;;  %s35_s13 = sshll.u32 %s104_s12, 4  ;;  %s37_s16 = sshll.u32 %s122_s1, 4  ;;  %s36_s13 = int_to_ptr.vmem [resolvable:$true] %s35_s13  ;;  %s38_s16 = int_to_ptr.hbm [resolvable:$true] %s37_s16 }
  0x78   :  { %v26_v1 = vpop.permute.xlu0 %25 }
  0x79   :  { %29 = vst.msk [vmem:[#allocation5] sm:$0xff] %vm28_vm0, %v26_v1 }
  0x7a   :  { %40 = dma.vmem_to_hbm [thread:$0]  %s36_s13, 128, %s38_s16, [#allocation4]  }
  0x7b   :  { %100 = dma.done.wait [#allocation4], 128  }
  0x7c   :  { %101 = vsyncadd [#allocation4], 4294967168 }
  0x7d   :  { %45 = vsyncpa [#allocation3], 1 }
  0x7e   :  { %46 = vsyncpa [#allocation4], 1 }

</bundles_post_ra>
